<compile_context>
chip_gen: v5e
topology: v5e:2x2
jax: 0.10.0
libtpu: 0.0.40
codegen_flags: <defaults>
</compile_context>

<pallas_src>
import jax
import jax.numpy as jnp
from jax.experimental import pallas as pl
from jax.experimental.pallas import tpu as pltpu

LANE = 128                 # vreg lane width (fast axis)
SUBLANE = 8                # f32 sublane count
GRANULE = SUBLANE * LANE   # 1024-row pad granule (bounds pad waste to <0.1% for large N)


def _affine_kernel(coef_ref, x_ref, o_ref):
    """coef_ref: SMEM (3,) = [wf0, wf1, bf]  (both Linear layers folded — exact)
       x_ref   : VMEM (2, tr, LANE) — feature-major, lane-dense batch tile
       o_ref   : VMEM (tr, LANE)

    Two scalar-coefficient FMAs + bias on the VPU; full-vreg unmasked loads and
    stores.  Deliberately nothing else (review item 9): the kernel is HBM-bound.
    """
    o_ref[...] = (x_ref[0] * coef_ref[0]
                  + x_ref[1] * coef_ref[1]
                  + coef_ref[2]).astype(o_ref.dtype)


def _fold_params(w1, b1, w2, b2):
    """Fold Linear(2->5) and Linear(5->1) into 3 scalars (exact f32 elementwise math)."""
    w2c = w2.reshape(-1)                          # (5,)
    wf = jnp.sum(w1 * w2c[None, :], axis=1)       # (2,)  == (w1 @ w2)
    bf = jnp.sum(b1 * w2c) + b2[0]                # ()    == (b1 @ w2 + b2)
    return jnp.stack([wf[0], wf[1], bf]).astype(jnp.float32)   # (3,) -> SMEM


def circle_model_v0_feature_major(x_fm, w1, b1, w2, b2, *, max_block_rows=4096):
    """Primary entry: x_fm is FEATURE-MAJOR (2, N) float32 (review option (a)).

    No wrapper transpose: the only layout op is a free contiguous reshape to
    (2, R, 128).  Returns (N, 1) float32 matching layer_2(layer_1(x)).
    """
    f, N = x_fm.shape
    assert f == 2
    coef = _fold_params(w1, b1, w2, b2)

    # --- pad only to the 1024-row granule (review item 2) -------------------
    n_pad = pl.cdiv(N, GRANULE) * GRANULE
    if n_pad != N:
        x_fm = jnp.pad(x_fm, ((0, 0), (0, n_pad - N)))
    R = n_pad // LANE                       # slab rows; always a multiple of 8
    xt = x_fm.reshape(2, R, LANE)           # free reshape — no data movement

    # --- tile selection (review items 3/4/5/8) ------------------------------
    tr = min(max_block_rows, R)
    if R > SUBLANE:
        tr = min(tr, pl.cdiv(R, 2))         # >= 2 grid steps -> both v7x TCs busy
    tr = max(SUBLANE, (tr // SUBLANE) * SUBLANE)   # (8,128) sublane rule
    grid = (pl.cdiv(R, tr),)                # Pallas handles the ragged last block

    # One input block (2,tr,128) + one output block (tr,128), double buffered by
    # the pipeline; raise the scoped-VMEM limit explicitly so large tiles don't
    # hit the 16/32 MiB defaults (stays well inside 64 MiB physical on v7x).
    blk_bytes = (2 * tr * LANE + tr * LANE) * 4
    vmem_limit = int(max(32 * 1024 * 1024, 3 * blk_bytes))

    out = pl.pallas_call(
        _affine_kernel,
        out_shape=jax.ShapeDtypeStruct((R, LANE), x_fm.dtype),
        grid_spec=pltpu.PrefetchScalarGridSpec(
            num_scalar_prefetch=0,
            grid=grid,
            in_specs=[
                # folded scalars live in SMEM (no padded VMEM tile, no broadcasts)
                pl.BlockSpec(memory_space=pltpu.MemorySpace.SMEM),
                # lane-dense feature-major batch tile
                pl.BlockSpec((2, tr, LANE), lambda i: (0, i, 0)),
            ],
            out_specs=pl.BlockSpec((tr, LANE), lambda i: (i, 0)),
        ),
        compiler_params=pltpu.CompilerParams(
            dimension_semantics=("parallel",),   # shard batch grid across v7x's 2 TCs
            vmem_limit_bytes=vmem_limit,
        ),
    )(coef, xt)

    out = out.reshape(n_pad, 1)             # free reshape
    if n_pad != N:
        out = out[:N]                        # cheap contiguous prefix slice (item 7);
                                             # consumers may keep the padded slab instead
    return out


def circle_model_v0(x, w1, b1, w2, b2, *, max_block_rows=4096):
    """PyTorch-layout compatibility entry: x is (N, 2) float32, returns (N, 1).

    Pays exactly one fused XLA transpose/pad pass (~16 B/row) to reach the
    feature-major layout.  Pipelines that can produce (2, N) data should call
    `circle_model_v0_feature_major` directly and skip that pass entirely.
    """
    N, f = x.shape
    assert f == 2
    return circle_model_v0_feature_major(x.T, w1, b1, w2, b2,
                                          max_block_rows=max_block_rows)


def _init_linear(key, in_f, out_f):
    """Deterministic init mimicking nn.Linear's uniform(-1/sqrt(in), 1/sqrt(in))."""
    kw, kb = jax.random.split(key)
    bound = 1.0 / jnp.sqrt(jnp.float32(in_f))
    # Stored as (in_f, out_f) == PyTorch weight.T so the math is x @ W + b.
    w = jax.random.uniform(kw, (in_f, out_f), jnp.float32, -bound, bound)
    b = jax.random.uniform(kb, (out_f,), jnp.float32, -bound, bound)
    return w, b


def _reference(x, w1, b1, w2, b2):
    """Plain-JAX layer_2(layer_1(x)) with full f32 dot precision."""
    hid = jnp.dot(x, w1, precision=jax.lax.Precision.HIGHEST) + b1
    return jnp.dot(hid, w2, precision=jax.lax.Precision.HIGHEST) + b2


if __name__ == "__main__":
    key = jax.random.PRNGKey(0)
    k_x, k_x2, k_l1, k_l2 = jax.random.split(key, 4)

    w1, b1 = _init_linear(k_l1, 2, 5)
    w2, b2 = _init_linear(k_l2, 5, 1)

    fwd = jax.jit(circle_model_v0)
    fwd_fm = jax.jit(circle_model_v0_feature_major)

    # --- make_circles-sized batch: exercises the padded-tail path (1000 -> 1024)
    N = 1000
    x = jax.random.normal(k_x, (N, 2), jnp.float32)
    ref = _reference(x, w1, b1, w2, b2)

    out = jax.block_until_ready(fwd(x, w1, b1, w2, b2))
    assert out.shape == (N, 1), out.shape
    assert jnp.allclose(out, ref, atol=1e-5, rtol=1e-5), "mismatch (N,2) entry"

    out_fm = jax.block_until_ready(fwd_fm(x.T, w1, b1, w2, b2))
    assert out_fm.shape == (N, 1), out_fm.shape
    assert jnp.allclose(out_fm, ref, atol=1e-5, rtol=1e-5), "mismatch feature-major entry"

    # --- larger batch: multi-step "parallel" grid (both v7x TCs) + padded tail
    N2 = 6000
    x2 = jax.random.normal(k_x2, (N2, 2), jnp.float32)
    ref2 = _reference(x2, w1, b1, w2, b2)
    out2 = jax.block_until_ready(fwd(x2, w1, b1, w2, b2))
    assert out2.shape == (N2, 1), out2.shape
    assert jnp.allclose(out2, ref2, atol=1e-5, rtol=1e-5), "mismatch multi-step grid"

    print("KERNEL_OK")
</pallas_src>

<mosaic_0001>
module attributes {stable_mosaic.version = 11 : i64} {
  func.func @_affine_kernel(%arg0: i32, %arg1: memref<3xf32, #tpu.memory_space<smem>>, %arg2: memref<2x8x128xf32, #tpu.memory_space<vmem>>, %arg3: memref<8x128xf32, #tpu.memory_space<vmem>>) attributes {dimension_semantics = [#tpu.dimension_semantics<parallel>], iteration_bounds = array<i64: 1>, scalar_prefetch = 0 : i64, scratch_operands = 0 : i64, tpu.core_type = #tpu.core_type<tc>, window_params = [{transform_indices = @transform_0, window_bounds = array<i64: 3>}, {transform_indices = @transform_1, window_bounds = array<i64: 2, 8, 128>}, {transform_indices = @transform_2, window_bounds = array<i64: 8, 128>}]} {
    %c0 = arith.constant 0 : index
    %c0_0 = arith.constant 0 : index
    %c0_1 = arith.constant 0 : index
    %0 = vector.load %arg2[%c0, %c0_0, %c0_1] : memref<2x8x128xf32, #tpu.memory_space<vmem>>, vector<1x8x128xf32>
    %1 = vector.shape_cast %0 : vector<1x8x128xf32> to vector<8x128xf32>
    %c0_2 = arith.constant 0 : index
    %2 = memref.load %arg1[%c0_2] : memref<3xf32, #tpu.memory_space<smem>>
    %3 = vector.broadcast %2 : f32 to vector<8x128xf32>
    %4 = arith.mulf %1, %3 : vector<8x128xf32>
    %c1 = arith.constant 1 : index
    %c0_3 = arith.constant 0 : index
    %c0_4 = arith.constant 0 : index
    %5 = vector.load %arg2[%c1, %c0_3, %c0_4] : memref<2x8x128xf32, #tpu.memory_space<vmem>>, vector<1x8x128xf32>
    %6 = vector.shape_cast %5 : vector<1x8x128xf32> to vector<8x128xf32>
    %c1_5 = arith.constant 1 : index
    %7 = memref.load %arg1[%c1_5] : memref<3xf32, #tpu.memory_space<smem>>
    %8 = vector.broadcast %7 : f32 to vector<8x128xf32>
    %9 = arith.mulf %6, %8 : vector<8x128xf32>
    %10 = arith.addf %4, %9 : vector<8x128xf32>
    %c2 = arith.constant 2 : index
    %11 = memref.load %arg1[%c2] : memref<3xf32, #tpu.memory_space<smem>>
    %12 = vector.broadcast %11 : f32 to vector<8x128xf32>
    %13 = arith.addf %10, %12 : vector<8x128xf32>
    %c0_6 = arith.constant 0 : index
    %c0_7 = arith.constant 0 : index
    %14 = vector.load %arg3[%c0_6, %c0_7] : memref<8x128xf32, #tpu.memory_space<vmem>>, vector<8x128xf32>
    tpu.vector_store %arg3[%c0_6, %c0_7], %13 {strides = array<i32>} : memref<8x128xf32, #tpu.memory_space<vmem>>, vector<8x128xf32>,
    return
  }
  func.func @transform_0(%arg0: i32) -> i32 {
    %c0_i32 = arith.constant 0 : i32
    %c0_i32_0 = arith.constant 0 : i32
    return %c0_i32 : i32
  }
  func.func @transform_1(%arg0: i32) -> (i32, i32, i32) {
    %c0_i32 = arith.constant 0 : i32
    %c0_i32_0 = arith.constant 0 : i32
    %c0_i32_1 = arith.constant 0 : i32
    return %c0_i32, %arg0, %c0_i32_0 : i32, i32, i32
  }
  func.func @transform_2(%arg0: i32) -> (i32, i32) {
    %c0_i32 = arith.constant 0 : i32
    %c0_i32_0 = arith.constant 0 : i32
    return %arg0, %c0_i32 : i32, i32
  }
}

</mosaic_0001>

<bundles_post_ra>
// kernel: circle_model_v0.1
= control target key start
LH: loop header
LB: loop body
LE: loop exit
PB: predicated region body
PF: predicated region fallthrough
CT: control target
= control target key end

     0   :  { %7 = vsyncpa [#allocation4], 0  ;;  %s130_s0 = inlined_call_operand.vmem [shape: f32[3], index: 0, kind: input, shape index: {}]   ;;  %s131_s1 = inlined_call_operand.vmem [shape: f32[2,8,128], index: 1, kind: input, shape index: {}]   ;;  %s132_s2 = inlined_call_operand.hbm [shape: f32[8,128], index: 2, kind: output, shape index: {}]  }
   0x1   :  { %8 = vsyncpa [#allocation3], 0  ;;  %s14_s11 = sshll.u32 %s130_s0, 4  ;;  %s101_s12 = smov [#allocation2]   ;;  %s15_s11 = int_to_ptr.vmem [resolvable:$true] %s14_s11 }
   0x2   :  { %17 = dma.vmem_to_smem %s15_s11, 16, %s101_s12, [#allocation4]  }
   0x3   :  { %97 = dma.done.wait [#allocation4], 16  }
   0x4   :  { %98 = vsyncadd [#allocation4], 4294967280 }
   0x5   :  { %24 = sfence }
   0x6   :  { %s26_s13 = sld [smem:[#allocation2]]  ;;  %v25_v0 = vld [vmem:[%s131_s1] sm:$0xff]  ;;  %v56_v1 = vld [vmem:[%s131_s1 + $0x8] sm:$0xff]  ;;  %s102_s0 = smov [#allocation5]  }
   0x7   :  { %s57_s14 = sld [smem:[#allocation2 + $0x1]]  ;;  %s44_s20 = sshll.u32 %s102_s0, 4  ;;  %s45_s20 = int_to_ptr.vmem [resolvable:$true] %s44_s20 }
   0x8   :  { %s58_s15 = sld [smem:[#allocation2 + $0x2]]  ;;  %s46_s23 = sshll.u32 %s132_s2, 4  ;;  %s47_s23 = int_to_ptr.hbm [resolvable:$true] %s46_s23 }
   0xc   :  { %v27_v2 = vstv %s26_s13 }
   0xd   :  { %v28_v3 = vmul.f32 %v27_v2, %v25_v0  ;;  %v32_v4 = vstv %s57_s14 }
   0xe   :  { %v33_v5 = vmul.f32 %v56_v1, %v32_v4  ;;  %v36_v6 = vstv %s58_s15 }
  0x10   :  { %v34_v7 = vadd.f32 %v33_v5, %v28_v3 }
  0x12   :  { %v37_v8 = vadd.f32 %v36_v6, %v34_v7 }
  0x14   :  { %38 = vst [vmem:[#allocation5] sm:$0xff] %v37_v8 }
  0x15   :  { %49 = dma.vmem_to_hbm [thread:$0]  %s45_s20, 128, %s47_s23, [#allocation3]  }
  0x16   :  { %99 = dma.done.wait [#allocation3], 128  }
  0x17   :  { %100 = vsyncadd [#allocation3], 4294967168 }
  0x18   :  { %54 = vsyncpa [#allocation3], 1 }
  0x19   :  { %55 = vsyncpa [#allocation4], 1 }

</bundles_post_ra>
